<compile_context>
chip_gen: v7x
topology: tpu7x:2x2x1
jax: 0.10.0
libtpu: 0.0.40
codegen_flags: <defaults>
</compile_context>

<pallas_src>
import functools
import math

import jax
import jax.numpy as jnp
from jax import lax
from jax.experimental import pallas as pl
from jax.experimental.pallas import tpu as pltpu

# A @ B^T via dot_general (contract the last dims of both operands) -- avoids
# an explicit XLU transpose of the K tile inside the kernel.
_NT_DIMS = (((1,), (1,)), ((), ()))


def _pick_tile(total, target):
    """Largest tile <= target that divides `total`, else `total` (full dim).

    The returned value always satisfies the Mosaic block rule: it either
    divides the array dimension exactly or equals the full dimension.
    """
    if total <= target:
        return total
    for cand in (target, 512, 256, 128, 64, 32, 16, 8):
        if cand <= target and total % cand == 0:
            return cand
    return total


def _const_spec(block_shape, index_map):
    """BlockSpec for a block whose index_map is constant over the whole grid.

    Single-buffered (pl.Buffered(1)): double-buffering a block that never
    changes only doubles its VMEM footprint.  Falls back to the default
    pipeline mode on jax versions that lack the kwarg.
    """
    try:
        return pl.BlockSpec(block_shape, index_map, pipeline_mode=pl.Buffered(1))
    except TypeError:  # older jax: no pipeline_mode kwarg
        return pl.BlockSpec(block_shape, index_map)


def _qkv_proj_kernel(x_ref, w_ref, b_ref, q_ref, k_ref, v_ref, *,
                     num_heads, d_k):
    """y = x @ [Wq^T | Wk^T | Wv^T] + b, stored head-major in bf16.

    x_ref: (tm, D) bf16;  w_ref: (D, 3D) bf16 (1/sqrt(d_k) folded into the Wq
    columns);  b_ref: (1, 3D) f32;  q/k/v_ref: (H, tm, d_k) bf16 outputs.
    """
    d_model = num_heads * d_k
    y = jnp.dot(x_ref[...], w_ref[...],
                preferred_element_type=jnp.float32) + b_ref[...]
    # Head-major scatter: paid once here so the attention kernel reads
    # contiguous (tile, d_k) slabs via BlockSpec with no in-kernel slicing.
    # TODO(synk): convert to a fori_loop if num_heads grows past ~32.
    for h in range(num_heads):
        lo = h * d_k
        q_ref[h] = y[:, lo:lo + d_k].astype(jnp.bfloat16)
        k_ref[h] = y[:, d_model + lo:d_model + lo + d_k].astype(jnp.bfloat16)
        v_ref[h] = y[:, 2 * d_model + lo:2 * d_model + lo + d_k].astype(jnp.bfloat16)


def _flash_attn_kernel(q_ref, k_ref, v_ref, wo_ref, bo_ref, o_ref,
                       m_ref, l_ref, acc_ref, oacc_ref):
    """Online-softmax attention with a fused output projection.

    grid = (B, n_q, H, n_kv); kv axis innermost ("arbitrary").
    q_ref: (1, tq, d_k) bf16;  k_ref/v_ref: (1, tk, d_k) bf16;
    wo_ref: (d_k, D) bf16 (rows of W_o^T for the current head);
    bo_ref: (1, D) f32;  o_ref: (tq, D) out dtype (resident across h and kv).
    Scratch: m/l (tq, 1) f32, acc (tq, d_k) f32, oacc (tq, D) f32.
    """
    h = pl.program_id(2)
    ki = pl.program_id(3)
    last_h = pl.num_programs(2) - 1
    last_ki = pl.num_programs(3) - 1

    @pl.when(jnp.logical_and(h == 0, ki == 0))
    def _():
        oacc_ref[...] = jnp.zeros_like(oacc_ref)

    @pl.when(ki == 0)
    def _():
        m_ref[...] = jnp.full_like(m_ref, -jnp.inf)
        l_ref[...] = jnp.zeros_like(l_ref)
        acc_ref[...] = jnp.zeros_like(acc_ref)

    q = q_ref[0]                                    # (tq, d_k) bf16 (pre-scaled)
    kt = k_ref[0]                                   # (tk, d_k) bf16
    vt = v_ref[0]                                   # (tk, d_k) bf16

    # scores = q @ k^T, no explicit transpose, f32 accumulation.
    s = lax.dot_general(q, kt, _NT_DIMS,
                        preferred_element_type=jnp.float32)   # (tq, tk)

    m_prev = m_ref[...]
    m_new = jnp.maximum(m_prev, jnp.max(s, axis=-1, keepdims=True))
    alpha = jnp.exp(m_prev - m_new)
    p = jnp.exp(s - m_new)
    l_ref[...] = alpha * l_ref[...] + jnp.sum(p, axis=-1, keepdims=True)
    acc_ref[...] = alpha * acc_ref[...] + jnp.dot(
        p.astype(jnp.bfloat16), vt, preferred_element_type=jnp.float32)
    m_ref[...] = m_new

    # End of the kv loop for this head: normalize (exact divide, once per
    # head) and fold the head output straight into the W_o accumulator, so the
    # concatenated (S, D) attention output is never materialized.
    @pl.when(ki == last_ki)
    def _():
        head_out = acc_ref[...] / l_ref[...]                   # (tq, d_k) f32
        oacc_ref[...] += jnp.dot(head_out.astype(jnp.bfloat16), wo_ref[...],
                                 preferred_element_type=jnp.float32)

    @pl.when(jnp.logical_and(h == last_h, ki == last_ki))
    def _():
        o_ref[...] = (oacc_ref[...] + bo_ref[...]).astype(o_ref.dtype)


def multi_head_attention(x, params, *, num_heads,
                         q_tile_target=256, kv_tile_target=512,
                         row_tile_target=256):
    """x: (B, S, d_model). params follow PyTorch Linear convention (y = x W^T + b)."""
    B, S, D = x.shape
    assert D % num_heads == 0
    d_k = D // num_heads
    assert d_k % 8 == 0 or num_heads == 1, "head_dim must be a multiple of 8"
    out_dtype = x.dtype
    scale = 1.0 / math.sqrt(d_k)

    # ---- host-side weight prep (one-time layout plumbing, no kernel cost) ----
    wq_t = params["W_q"].astype(jnp.float32).T * scale     # fold 1/sqrt(d_k)
    wk_t = params["W_k"].astype(jnp.float32).T
    wv_t = params["W_v"].astype(jnp.float32).T
    w_qkv_t = jnp.concatenate([wq_t, wk_t, wv_t], axis=1).astype(jnp.bfloat16)
    b_qkv = jnp.concatenate([params["b_q"].astype(jnp.float32) * scale,
                             params["b_k"].astype(jnp.float32),
                             params["b_v"].astype(jnp.float32)]).reshape(1, 3 * D)
    wo_t = params["W_o"].astype(jnp.float32).T.astype(jnp.bfloat16)
    bo = params["b_o"].reshape(1, D).astype(jnp.float32)

    x2d = x.reshape(B * S, D).astype(jnp.bfloat16)

    # ---------------- stage 1: fused QKV projection ----------------
    tm = _pick_tile(B * S, row_tile_target)                 # fat M for the MXU
    n_m = (B * S) // tm
    qkv_struct = jax.ShapeDtypeStruct((num_heads, B * S, d_k), jnp.bfloat16)
    proj_cost = pl.CostEstimate(
        flops=int(2 * B * S * D * 3 * D),
        transcendentals=0,
        bytes_accessed=int(x2d.size * 2 + w_qkv_t.size * 2 + b_qkv.size * 4
                           + 3 * B * S * D * 2))

    q_hm, k_hm, v_hm = pl.pallas_call(
        functools.partial(_qkv_proj_kernel, num_heads=num_heads, d_k=d_k),
        out_shape=(qkv_struct, qkv_struct, qkv_struct),
        grid_spec=pltpu.PrefetchScalarGridSpec(
            num_scalar_prefetch=0,
            grid=(n_m,),
            in_specs=[
                pl.BlockSpec((tm, D), lambda i: (i, 0)),            # x rows
                _const_spec((D, 3 * D), lambda i: (0, 0)),          # W_qkv^T
                _const_spec((1, 3 * D), lambda i: (0, 0)),          # b_qkv
            ],
            out_specs=[
                pl.BlockSpec((num_heads, tm, d_k), lambda i: (0, i, 0)),
                pl.BlockSpec((num_heads, tm, d_k), lambda i: (0, i, 0)),
                pl.BlockSpec((num_heads, tm, d_k), lambda i: (0, i, 0)),
            ],
        ),
        compiler_params=pltpu.CompilerParams(
            dimension_semantics=("parallel",),
            vmem_limit_bytes=48 * 1024 * 1024),
        cost_estimate=proj_cost,
    )(x2d, w_qkv_t, b_qkv)

    # ------------- stage 2: flash attention + fused W_o -------------
    tq = _pick_tile(S, q_tile_target)
    tk = _pick_tile(S, kv_tile_target)
    n_q = S // tq
    n_kv = S // tk

    attn_cost = pl.CostEstimate(
        flops=int(4 * B * S * S * D + 2 * B * S * D * D),
        transcendentals=int(B * num_heads * S * S),
        bytes_accessed=int(3 * B * S * D * 2 + D * D * 2 + D * 4
                           + B * S * D * jnp.dtype(out_dtype).itemsize))

    out2d = pl.pallas_call(
        _flash_attn_kernel,
        out_shape=jax.ShapeDtypeStruct((B * S, D), out_dtype),
        grid_spec=pltpu.PrefetchScalarGridSpec(
            num_scalar_prefetch=0,
            grid=(B, n_q, num_heads, n_kv),
            in_specs=[
                pl.BlockSpec((1, tq, d_k),
                             lambda b, qi, h, ki: (h, b * n_q + qi, 0)),   # q
                pl.BlockSpec((1, tk, d_k),
                             lambda b, qi, h, ki: (h, b * n_kv + ki, 0)),  # k
                pl.BlockSpec((1, tk, d_k),
                             lambda b, qi, h, ki: (h, b * n_kv + ki, 0)),  # v
                pl.BlockSpec((d_k, D), lambda b, qi, h, ki: (h, 0)),       # W_o^T rows
                _const_spec((1, D), lambda b, qi, h, ki: (0, 0)),          # b_o
            ],
            out_specs=pl.BlockSpec((tq, D),
                                   lambda b, qi, h, ki: (b * n_q + qi, 0)),
            scratch_shapes=[
                pltpu.VMEM((tq, 1), jnp.float32),     # m  (running max)
                pltpu.VMEM((tq, 1), jnp.float32),     # l  (running denom)
                pltpu.VMEM((tq, d_k), jnp.float32),   # per-head numerator
                pltpu.VMEM((tq, D), jnp.float32),     # fused W_o accumulator
            ],
        ),
        compiler_params=pltpu.CompilerParams(
            dimension_semantics=("parallel", "parallel", "arbitrary", "arbitrary"),
            vmem_limit_bytes=48 * 1024 * 1024),
        cost_estimate=attn_cost,
    )(q_hm, k_hm, v_hm, wo_t, bo)

    return out2d.reshape(B, S, D)


def _reference(x, params, *, num_heads):
    """Pure-JAX f32 reference mirroring the PyTorch module (mask=None)."""
    B, S, D = x.shape
    d_k = D // num_heads

    def lin(t, w, b):
        return jnp.einsum("bsd,od->bso", t, w) + b

    q = lin(x, params["W_q"], params["b_q"]).reshape(B, S, num_heads, d_k).transpose(0, 2, 1, 3)
    k = lin(x, params["W_k"], params["b_k"]).reshape(B, S, num_heads, d_k).transpose(0, 2, 1, 3)
    v = lin(x, params["W_v"], params["b_v"]).reshape(B, S, num_heads, d_k).transpose(0, 2, 1, 3)

    scores = jnp.einsum("bhqd,bhkd->bhqk", q, k) / math.sqrt(d_k)
    probs = jax.nn.softmax(scores, axis=-1)
    out = jnp.einsum("bhqk,bhkd->bhqd", probs, v)
    out = out.transpose(0, 2, 1, 3).reshape(B, S, D)
    return lin(out, params["W_o"], params["b_o"])


if __name__ == "__main__":
    B, S, D, H = 2, 8, 32, 4

    key = jax.random.PRNGKey(0)
    keys = jax.random.split(key, 9)

    def init_w(k):
        return jax.random.normal(k, (D, D), dtype=jnp.float32) * 0.02

    def init_b(k):
        return jax.random.normal(k, (D,), dtype=jnp.float32) * 0.02

    params = {
        "W_q": init_w(keys[0]), "b_q": init_b(keys[1]),
        "W_k": init_w(keys[2]), "b_k": init_b(keys[3]),
        "W_v": init_w(keys[4]), "b_v": init_b(keys[5]),
        "W_o": init_w(keys[6]), "b_o": init_b(keys[7]),
    }
    x = jax.random.normal(keys[8], (B, S, D), dtype=jnp.float32)

    out = multi_head_attention(x, params, num_heads=H)
    out = jax.block_until_ready(out)

    ref = _reference(x, params, num_heads=H)
    assert out.shape == (B, S, D)
    # bf16 matmul operands (f32 accumulation / softmax) -> loosened tolerance.
    assert jnp.allclose(out, ref, rtol=2e-2, atol=2e-2), "mismatch vs reference"

    print("KERNEL_OK")
</pallas_src>

<mosaic_0001>
module attributes {stable_mosaic.version = 11 : i64} {
  func.func @_qkv_proj_kernel(%arg0: i32, %arg1: memref<16x32xbf16, #tpu.memory_space<vmem>>, %arg2: memref<32x96xbf16, #tpu.memory_space<vmem>>, %arg3: memref<1x96xf32, #tpu.memory_space<vmem>>, %arg4: memref<4x16x8xbf16, #tpu.memory_space<vmem>>, %arg5: memref<4x16x8xbf16, #tpu.memory_space<vmem>>, %arg6: memref<4x16x8xbf16, #tpu.memory_space<vmem>>) attributes {dimension_semantics = [#tpu.dimension_semantics<parallel>], iteration_bounds = array<i64: 1>, scalar_prefetch = 0 : i64, scratch_operands = 0 : i64, tpu.core_type = #tpu.core_type<tc>, window_params = [{transform_indices = @transform_0, window_bounds = array<i64: 16, 32>}, {pipeline_mode = #tpu.pipeline_mode<synchronous>, transform_indices = @transform_1, window_bounds = array<i64: 32, 96>}, {pipeline_mode = #tpu.pipeline_mode<synchronous>, transform_indices = @transform_2, window_bounds = array<i64: 1, 96>}, {transform_indices = @transform_3, window_bounds = array<i64: 4, 16, 8>}, {transform_indices = @transform_4, window_bounds = array<i64: 4, 16, 8>}, {transform_indices = @transform_5, window_bounds = array<i64: 4, 16, 8>}]} {
    %c0 = arith.constant 0 : index
    %c0_0 = arith.constant 0 : index
    %0 = vector.load %arg1[%c0, %c0_0] : memref<16x32xbf16, #tpu.memory_space<vmem>>, vector<16x32xbf16>
    %c0_1 = arith.constant 0 : index
    %c0_2 = arith.constant 0 : index
    %1 = vector.load %arg2[%c0_1, %c0_2] : memref<32x96xbf16, #tpu.memory_space<vmem>>, vector<32x96xbf16>
    %cst = arith.constant dense<0.000000e+00> : vector<16x96xf32>
    %2 = tpu.matmul %0, %1, %cst {dimension_numbers = #tpu.dot_dimension_numbers<[1], [0], [0], [1], [0, 0, 1, 1], [], []>} : vector<16x32xbf16>, vector<32x96xbf16>, vector<16x96xf32> -> vector<16x96xf32>
    %c0_3 = arith.constant 0 : index
    %c0_4 = arith.constant 0 : index
    %3 = vector.load %arg3[%c0_3, %c0_4] : memref<1x96xf32, #tpu.memory_space<vmem>>, vector<1x96xf32>
    %4 = vector.broadcast %3 : vector<1x96xf32> to vector<16x96xf32>
    %5 = arith.addf %2, %4 : vector<16x96xf32>
    %6 = vector.extract_strided_slice %5 {offsets = [0, 0], sizes = [16, 8], strides = [1, 1]} : vector<16x96xf32> to vector<16x8xf32>
    %7 = arith.truncf %6 : vector<16x8xf32> to vector<16x8xbf16>
    %c0_5 = arith.constant 0 : index
    %c0_6 = arith.constant 0 : index
    %c0_7 = arith.constant 0 : index
    %8 = vector.load %arg4[%c0_5, %c0_6, %c0_7] : memref<4x16x8xbf16, #tpu.memory_space<vmem>>, vector<1x16x8xbf16>
    %9 = vector.shape_cast %8 : vector<1x16x8xbf16> to vector<16x8xbf16>
    %10 = vector.shape_cast %7 : vector<16x8xbf16> to vector<1x16x8xbf16>
    tpu.vector_store %arg4[%c0_5, %c0_6, %c0_7], %10 {strides = array<i32>} : memref<4x16x8xbf16, #tpu.memory_space<vmem>>, vector<1x16x8xbf16>,
    %11 = vector.extract_strided_slice %5 {offsets = [0, 32], sizes = [16, 8], strides = [1, 1]} : vector<16x96xf32> to vector<16x8xf32>
    %12 = arith.truncf %11 : vector<16x8xf32> to vector<16x8xbf16>
    %c0_8 = arith.constant 0 : index
    %c0_9 = arith.constant 0 : index
    %c0_10 = arith.constant 0 : index
    %13 = vector.load %arg5[%c0_8, %c0_9, %c0_10] : memref<4x16x8xbf16, #tpu.memory_space<vmem>>, vector<1x16x8xbf16>
    %14 = vector.shape_cast %13 : vector<1x16x8xbf16> to vector<16x8xbf16>
    %15 = vector.shape_cast %12 : vector<16x8xbf16> to vector<1x16x8xbf16>
    tpu.vector_store %arg5[%c0_8, %c0_9, %c0_10], %15 {strides = array<i32>} : memref<4x16x8xbf16, #tpu.memory_space<vmem>>, vector<1x16x8xbf16>,
    %16 = vector.extract_strided_slice %5 {offsets = [0, 64], sizes = [16, 8], strides = [1, 1]} : vector<16x96xf32> to vector<16x8xf32>
    %17 = arith.truncf %16 : vector<16x8xf32> to vector<16x8xbf16>
    %c0_11 = arith.constant 0 : index
    %c0_12 = arith.constant 0 : index
    %c0_13 = arith.constant 0 : index
    %18 = vector.load %arg6[%c0_11, %c0_12, %c0_13] : memref<4x16x8xbf16, #tpu.memory_space<vmem>>, vector<1x16x8xbf16>
    %19 = vector.shape_cast %18 : vector<1x16x8xbf16> to vector<16x8xbf16>
    %20 = vector.shape_cast %17 : vector<16x8xbf16> to vector<1x16x8xbf16>
    tpu.vector_store %arg6[%c0_11, %c0_12, %c0_13], %20 {strides = array<i32>} : memref<4x16x8xbf16, #tpu.memory_space<vmem>>, vector<1x16x8xbf16>,
    %21 = vector.extract_strided_slice %5 {offsets = [0, 8], sizes = [16, 8], strides = [1, 1]} : vector<16x96xf32> to vector<16x8xf32>
    %22 = arith.truncf %21 : vector<16x8xf32> to vector<16x8xbf16>
    %c1 = arith.constant 1 : index
    %c0_14 = arith.constant 0 : index
    %c0_15 = arith.constant 0 : index
    %23 = vector.load %arg4[%c1, %c0_14, %c0_15] : memref<4x16x8xbf16, #tpu.memory_space<vmem>>, vector<1x16x8xbf16>
    %24 = vector.shape_cast %23 : vector<1x16x8xbf16> to vector<16x8xbf16>
    %25 = vector.shape_cast %22 : vector<16x8xbf16> to vector<1x16x8xbf16>
    tpu.vector_store %arg4[%c1, %c0_14, %c0_15], %25 {strides = array<i32>} : memref<4x16x8xbf16, #tpu.memory_space<vmem>>, vector<1x16x8xbf16>,
    %26 = vector.extract_strided_slice %5 {offsets = [0, 40], sizes = [16, 8], strides = [1, 1]} : vector<16x96xf32> to vector<16x8xf32>
    %27 = arith.truncf %26 : vector<16x8xf32> to vector<16x8xbf16>
    %c1_16 = arith.constant 1 : index
    %c0_17 = arith.constant 0 : index
    %c0_18 = arith.constant 0 : index
    %28 = vector.load %arg5[%c1_16, %c0_17, %c0_18] : memref<4x16x8xbf16, #tpu.memory_space<vmem>>, vector<1x16x8xbf16>
    %29 = vector.shape_cast %28 : vector<1x16x8xbf16> to vector<16x8xbf16>
    %30 = vector.shape_cast %27 : vector<16x8xbf16> to vector<1x16x8xbf16>
    tpu.vector_store %arg5[%c1_16, %c0_17, %c0_18], %30 {strides = array<i32>} : memref<4x16x8xbf16, #tpu.memory_space<vmem>>, vector<1x16x8xbf16>,
    %31 = vector.extract_strided_slice %5 {offsets = [0, 72], sizes = [16, 8], strides = [1, 1]} : vector<16x96xf32> to vector<16x8xf32>
    %32 = arith.truncf %31 : vector<16x8xf32> to vector<16x8xbf16>
    %c1_19 = arith.constant 1 : index
    %c0_20 = arith.constant 0 : index
    %c0_21 = arith.constant 0 : index
    %33 = vector.load %arg6[%c1_19, %c0_20, %c0_21] : memref<4x16x8xbf16, #tpu.memory_space<vmem>>, vector<1x16x8xbf16>
    %34 = vector.shape_cast %33 : vector<1x16x8xbf16> to vector<16x8xbf16>
    %35 = vector.shape_cast %32 : vector<16x8xbf16> to vector<1x16x8xbf16>
    tpu.vector_store %arg6[%c1_19, %c0_20, %c0_21], %35 {strides = array<i32>} : memref<4x16x8xbf16, #tpu.memory_space<vmem>>, vector<1x16x8xbf16>,
    %36 = vector.extract_strided_slice %5 {offsets = [0, 16], sizes = [16, 8], strides = [1, 1]} : vector<16x96xf32> to vector<16x8xf32>
    %37 = arith.truncf %36 : vector<16x8xf32> to vector<16x8xbf16>
    %c2 = arith.constant 2 : index
    %c0_22 = arith.constant 0 : index
    %c0_23 = arith.constant 0 : index
    %38 = vector.load %arg4[%c2, %c0_22, %c0_23] : memref<4x16x8xbf16, #tpu.memory_space<vmem>>, vector<1x16x8xbf16>
    %39 = vector.shape_cast %38 : vector<1x16x8xbf16> to vector<16x8xbf16>
    %40 = vector.shape_cast %37 : vector<16x8xbf16> to vector<1x16x8xbf16>
    tpu.vector_store %arg4[%c2, %c0_22, %c0_23], %40 {strides = array<i32>} : memref<4x16x8xbf16, #tpu.memory_space<vmem>>, vector<1x16x8xbf16>,
    %41 = vector.extract_strided_slice %5 {offsets = [0, 48], sizes = [16, 8], strides = [1, 1]} : vector<16x96xf32> to vector<16x8xf32>
    %42 = arith.truncf %41 : vector<16x8xf32> to vector<16x8xbf16>
    %c2_24 = arith.constant 2 : index
    %c0_25 = arith.constant 0 : index
    %c0_26 = arith.constant 0 : index
    %43 = vector.load %arg5[%c2_24, %c0_25, %c0_26] : memref<4x16x8xbf16, #tpu.memory_space<vmem>>, vector<1x16x8xbf16>
    %44 = vector.shape_cast %43 : vector<1x16x8xbf16> to vector<16x8xbf16>
    %45 = vector.shape_cast %42 : vector<16x8xbf16> to vector<1x16x8xbf16>
    tpu.vector_store %arg5[%c2_24, %c0_25, %c0_26], %45 {strides = array<i32>} : memref<4x16x8xbf16, #tpu.memory_space<vmem>>, vector<1x16x8xbf16>,
    %46 = vector.extract_strided_slice %5 {offsets = [0, 80], sizes = [16, 8], strides = [1, 1]} : vector<16x96xf32> to vector<16x8xf32>
    %47 = arith.truncf %46 : vector<16x8xf32> to vector<16x8xbf16>
    %c2_27 = arith.constant 2 : index
    %c0_28 = arith.constant 0 : index
    %c0_29 = arith.constant 0 : index
    %48 = vector.load %arg6[%c2_27, %c0_28, %c0_29] : memref<4x16x8xbf16, #tpu.memory_space<vmem>>, vector<1x16x8xbf16>
    %49 = vector.shape_cast %48 : vector<1x16x8xbf16> to vector<16x8xbf16>
    %50 = vector.shape_cast %47 : vector<16x8xbf16> to vector<1x16x8xbf16>
    tpu.vector_store %arg6[%c2_27, %c0_28, %c0_29], %50 {strides = array<i32>} : memref<4x16x8xbf16, #tpu.memory_space<vmem>>, vector<1x16x8xbf16>,
    %51 = vector.extract_strided_slice %5 {offsets = [0, 24], sizes = [16, 8], strides = [1, 1]} : vector<16x96xf32> to vector<16x8xf32>
    %52 = arith.truncf %51 : vector<16x8xf32> to vector<16x8xbf16>
    %c3 = arith.constant 3 : index
    %c0_30 = arith.constant 0 : index
    %c0_31 = arith.constant 0 : index
    %53 = vector.load %arg4[%c3, %c0_30, %c0_31] : memref<4x16x8xbf16, #tpu.memory_space<vmem>>, vector<1x16x8xbf16>
    %54 = vector.shape_cast %53 : vector<1x16x8xbf16> to vector<16x8xbf16>
    %55 = vector.shape_cast %52 : vector<16x8xbf16> to vector<1x16x8xbf16>
    tpu.vector_store %arg4[%c3, %c0_30, %c0_31], %55 {strides = array<i32>} : memref<4x16x8xbf16, #tpu.memory_space<vmem>>, vector<1x16x8xbf16>,
    %56 = vector.extract_strided_slice %5 {offsets = [0, 56], sizes = [16, 8], strides = [1, 1]} : vector<16x96xf32> to vector<16x8xf32>
    %57 = arith.truncf %56 : vector<16x8xf32> to vector<16x8xbf16>
    %c3_32 = arith.constant 3 : index
    %c0_33 = arith.constant 0 : index
    %c0_34 = arith.constant 0 : index
    %58 = vector.load %arg5[%c3_32, %c0_33, %c0_34] : memref<4x16x8xbf16, #tpu.memory_space<vmem>>, vector<1x16x8xbf16>
    %59 = vector.shape_cast %58 : vector<1x16x8xbf16> to vector<16x8xbf16>
    %60 = vector.shape_cast %57 : vector<16x8xbf16> to vector<1x16x8xbf16>
    tpu.vector_store %arg5[%c3_32, %c0_33, %c0_34], %60 {strides = array<i32>} : memref<4x16x8xbf16, #tpu.memory_space<vmem>>, vector<1x16x8xbf16>,
    %61 = vector.extract_strided_slice %5 {offsets = [0, 88], sizes = [16, 8], strides = [1, 1]} : vector<16x96xf32> to vector<16x8xf32>
    %62 = arith.truncf %61 : vector<16x8xf32> to vector<16x8xbf16>
    %c3_35 = arith.constant 3 : index
    %c0_36 = arith.constant 0 : index
    %c0_37 = arith.constant 0 : index
    %63 = vector.load %arg6[%c3_35, %c0_36, %c0_37] : memref<4x16x8xbf16, #tpu.memory_space<vmem>>, vector<1x16x8xbf16>
    %64 = vector.shape_cast %63 : vector<1x16x8xbf16> to vector<16x8xbf16>
    %65 = vector.shape_cast %62 : vector<16x8xbf16> to vector<1x16x8xbf16>
    tpu.vector_store %arg6[%c3_35, %c0_36, %c0_37], %65 {strides = array<i32>} : memref<4x16x8xbf16, #tpu.memory_space<vmem>>, vector<1x16x8xbf16>,
    return
  }
  func.func @transform_0(%arg0: i32) -> (i32, i32) {
    %c0_i32 = arith.constant 0 : i32
    %c0_i32_0 = arith.constant 0 : i32
    return %arg0, %c0_i32 : i32, i32
  }
  func.func @transform_1(%arg0: i32) -> (i32, i32) {
    %c0_i32 = arith.constant 0 : i32
    %c0_i32_0 = arith.constant 0 : i32
    %c0_i32_1 = arith.constant 0 : i32
    return %c0_i32, %c0_i32_0 : i32, i32
  }
  func.func @transform_2(%arg0: i32) -> (i32, i32) {
    %c0_i32 = arith.constant 0 : i32
    %c0_i32_0 = arith.constant 0 : i32
    %c0_i32_1 = arith.constant 0 : i32
    return %c0_i32, %c0_i32_0 : i32, i32
  }
  func.func @transform_3(%arg0: i32) -> (i32, i32, i32) {
    %c0_i32 = arith.constant 0 : i32
    %c0_i32_0 = arith.constant 0 : i32
    %c0_i32_1 = arith.constant 0 : i32
    return %c0_i32, %arg0, %c0_i32_0 : i32, i32, i32
  }
  func.func @transform_4(%arg0: i32) -> (i32, i32, i32) {
    %c0_i32 = arith.constant 0 : i32
    %c0_i32_0 = arith.constant 0 : i32
    %c0_i32_1 = arith.constant 0 : i32
    return %c0_i32, %arg0, %c0_i32_0 : i32, i32, i32
  }
  func.func @transform_5(%arg0: i32) -> (i32, i32, i32) {
    %c0_i32 = arith.constant 0 : i32
    %c0_i32_0 = arith.constant 0 : i32
    %c0_i32_1 = arith.constant 0 : i32
    return %c0_i32, %arg0, %c0_i32_0 : i32, i32, i32
  }
}

</mosaic_0001>

<bundles_post_ra>
// kernel: tpu_custom_call.1
= control target key start
LH: loop header
LB: loop body
LE: loop exit
PB: predicated region body
PF: predicated region fallthrough
CT: control target
= control target key end

     0   :  { %11 = vsyncpa [#allocation3], 0  ;;  %s523_s0 = inlined_call_operand.hbm [shape: bf16[16,32], index: 0, kind: input, shape index: {}]   ;;  %s524_s1 = inlined_call_operand.hbm [shape: bf16[32,96], index: 1, kind: input, shape index: {}]   ;;  %s525_s2 = inlined_call_operand.vmem [shape: f32[1,96], index: 2, kind: input, shape index: {}]   ;;  %s526_s3 = inlined_call_operand.vmem [shape: bf16[4,16,8], index: 3, kind: output, shape index: {0}]   ;;  %s527_s4 = inlined_call_operand.vmem [shape: bf16[4,16,8], index: 4, kind: output, shape index: {1}]   ;;  %s528_s5 = inlined_call_operand.vmem [shape: bf16[4,16,8], index: 5, kind: output, shape index: {2}]  }
   0x1   :  { %12 = vsyncpa [#allocation5], 0  ;;  %s348_s18 = smov [#allocation2]   ;;  %s300_s22 = scalar_lea.hbm %s523_s0, 128 }
   0x2   :  { %s18_s19 = sshll.u32 %s348_s18, 4  ;;  %p301_p0 = scmp.ne.s32.totalorder %s523_s0, %s300_s22  ;;  %s19_s19 = int_to_ptr.vmem [resolvable:$true] %s18_s19 }
   0x3   :  { %p304_p1 = scmp.lt.u32.totalorder %s300_s22, %s523_s0 }
   0x5   :  { %p306_p2 = pnand %p304_p1, %p301_p0 }
   0x7   :  { %309 = shalt.err (!%p306_p2)
}
   0x8   :  { %s310_s27 = scalar_lea.vmem %s19_s19, 128  ;;  %p315_p4 = scmp.lt.s32.totalorder %s19_s19, %s19_s19 }
   0x9   :  { %p311_p3 = scmp.ne.s32.totalorder %s19_s19, %s310_s27  ;;  %p316_p5 = scmp.lt.s32.totalorder %s310_s27, %s310_s27 }
   0xb   :  { %p317_p6 = por %p316_p5, %p315_p4 }
   0xd   :  { %p318_p7 = pnand %p317_p6, %p311_p3 }
   0xf   :  { %321 = shalt.err (!%p318_p7)
}
  0x10   :  { %s349_s28 = smov 64   ;;  %s350_s29 = smov 4  }
  0x11   :  { %24 = dma.hbm_to_vmem [thread:$0]  %s523_s0, 128, %s19_s19, [#allocation3], %s349_s28, %s349_s28, %s350_s29  }
  0x12   :  { %s351_s7 = smov [#allocation4]   ;;  %s322_s11 = scalar_lea.hbm %s524_s1, 256 }
  0x13   :  { %s30_s8 = sshll.u32 %s351_s7, 4  ;;  %p323_p8 = scmp.ne.s32.totalorder %s524_s1, %s322_s11  ;;  %s31_s8 = int_to_ptr.vmem [resolvable:$true] %s30_s8 }
  0x14   :  { %p326_p9 = scmp.lt.u32.totalorder %s322_s11, %s524_s1 }
  0x16   :  { %p328_p10 = pnand %p326_p9, %p323_p8 }
  0x18   :  { %331 = shalt.err (!%p328_p10)
}
  0x19   :  { %s332_s16 = scalar_lea.vmem %s31_s8, 256  ;;  %p337_p12 = scmp.lt.s32.totalorder %s31_s8, %s31_s8 }
  0x1a   :  { %p333_p11 = scmp.ne.s32.totalorder %s31_s8, %s332_s16  ;;  %p338_p13 = scmp.lt.s32.totalorder %s332_s16, %s332_s16 }
  0x1c   :  { %p339_p0 = por %p338_p13, %p337_p12 }
  0x1e   :  { %p340_p1 = pnand %p339_p0, %p333_p11 }
  0x20   :  { %343 = shalt.err (!%p340_p1)
}
  0x21   :  { %36 = dma.hbm_to_vmem [thread:$0]  %s524_s1, 256, %s31_s8, [#allocation5], %s349_s28, %s349_s28, %s350_s29  }
  0x22   :  { %344 = dma.done.wait [#allocation3], 128  }
  0x23   :  { %345 = vsyncadd [#allocation3], 4294967168 }
  0x24   :  { %346 = dma.done.wait [#allocation5], 256  }
  0x25   :  { %347 = vsyncadd [#allocation5], 4294967040  ;;  %v352_v0 = vmov 0.0   ;;  %vm353_vm0 = vmmov 0   ;;  %v297_v1 = vld [vmem:[#allocation4] sm:$0xff]   ;;  %v298_v2 = vld [vmem:[#allocation4 + $0x8] sm:$0xff]  }
  0x26   :  { %273 = vmatprep.subr.bf16.mxu0 %v352_v0  ;;  %277 = vmatprep.mubr.msk.bf16.mxu0 %vm353_vm0, %v352_v0  ;;  %v299_v3 = vld [vmem:[#allocation2] sm:$0xff]   ;;  %vm76_vm1 = vcmask 261120   ;;  %vm129_vm2 = vcmask 60416   ;;  %s354_s21 = smov 96   ;;  %s355_s23 = smov 120  }
  0x27   :  { %274 = vmatpush3.bf16.msra.mxu0 %v297_v1  ;;  %v243_v4 = vld [vmem:[%s525_s2] ss:$0 sm:$0xff]  ;;  %s356_s24 = smov 88   ;;  %s357_s25 = smov 56  }
  0x28   :  { %275 = vmatprep.subr.bf16.mxu0 %v352_v0  ;;  %s358_s26 = smov 112   ;;  %s359_s27 = smov 80  }
  0x29   :  { %s360_s29 = smov 48   ;;  %s361_s30 = smov 104  }
  0x2a   :  { %s362_s6 = smov 72  }
  0x2b   :  { %276 = vmatpush3.bf16.msra.mxu0 %v298_v2 }
  0x2e   :  { %278 = vmatmul.mubr.msk.bf16.vlgmr.msra.gmra.mrb[0].mxu0 %vm76_vm1, %v299_v3 }
 0x101   :  { %v114_v5 = vpop.f32.mrb[0].mxu0 }
 0x102   :  { %v115_v6 = vadd.f32 %v243_v4, %v114_v5  ;;  %v279_v7 = vpop.f32.mrb[1].mxu0 }
 0x103   :  { %v117_v8 = vpop.f32.mrb[2].mxu0 }
 0x104   :  { %v268_v9 = vpack.c.bf16 %v115_v6, %v115_v6  ;;  %v118_v10 = vadd.f32 %v243_v4, %v117_v8  ;;  %v280_v11 = vpop.f32.mrb[3].mxu0 }
 0x106   :  { %130 = vst.msk [vmem:[%s526_s3] sm:$0xf] %vm129_vm2, %v268_v9  ;;  %v269_v12 = vpack.c.bf16 %v118_v10, %v118_v10  ;;  %140 = vrot.lane.b32.xlu1 %v268_v9, %s349_s28  ;;  %132 = vrot.lane.b32.xlu0 %v268_v9, %s354_s21 }
 0x108   :  { %131 = vst.msk [vmem:[%s526_s3 + $0x4] sm:$0xf] %vm129_vm2, %v269_v12 }
 0x10a   :  { %148 = vrot.lane.b32.xlu0 %v268_v9, %s355_s23  ;;  %142 = vrot.lane.b32.xlu1 %v269_v12, %s349_s28  ;;  %s363_s28 = smov 40  }
 0x10e   :  { %157 = vrot.lane.b32.xlu0 %v268_v9, %s356_s24  ;;  %150 = vrot.lane.b32.xlu1 %v269_v12, %s355_s23 }
 0x112   :  { %166 = vrot.lane.b32.xlu0 %v268_v9, %s357_s25  ;;  %159 = vrot.lane.b32.xlu1 %v269_v12, %s356_s24 }
 0x116   :  { %175 = vrot.lane.b32.xlu0 %v268_v9, %s358_s26  ;;  %168 = vrot.lane.b32.xlu1 %v269_v12, %s357_s25 }
 0x11a   :  { %184 = vrot.lane.b32.xlu0 %v268_v9, %s359_s27  ;;  %177 = vrot.lane.b32.xlu1 %v269_v12, %s358_s26 }
 0x11e   :  { %193 = vrot.lane.b32.xlu0 %v268_v9, %s360_s29  ;;  %186 = vrot.lane.b32.xlu1 %v269_v12, %s359_s27 }
 0x122   :  { %202 = vrot.lane.b32.xlu0 %v268_v9, %s361_s30  ;;  %195 = vrot.lane.b32.xlu1 %v269_v12, %s360_s29 }
 0x126   :  { %211 = vrot.lane.b32.xlu0 %v268_v9, %s362_s6  ;;  %204 = vrot.lane.b32.xlu1 %v269_v12, %s361_s30 }
 0x12a   :  { %213 = vrot.lane.b32.xlu1 %v269_v12, %s362_s6  ;;  %134 = vrot.lane.b32.xlu0 %v269_v12, %s354_s21 }
 0x12e   :  { %222 = vrot.lane.b32.xlu1 %v269_v12, %s363_s28  ;;  %220 = vrot.lane.b32.xlu0 %v268_v9, %s363_s28 }
 0x178   :  { %v141_v13 = vpop.permute.xlu1 %140  ;;  %v133_v14 = vpop.permute.xlu0 %132 }
 0x179   :  { %146 = vst.msk [vmem:[%s528_s5] sm:$0xf] %vm129_vm2, %v141_v13  ;;  %138 = vst.msk [vmem:[%s527_s4] sm:$0xf] %vm129_vm2, %v133_v14 }
 0x17c   :  { %v149_v15 = vpop.permute.xlu0 %148  ;;  %v143_v16 = vpop.permute.xlu1 %142 }
 0x17d   :  { %250 = vst.msk [vmem:[%s526_s3 + $0x8] sm:$0xf] %vm129_vm2, %v149_v15  ;;  %147 = vst.msk [vmem:[%s528_s5 + $0x4] sm:$0xf] %vm129_vm2, %v143_v16 }
 0x180   :  { %v158_v17 = vpop.permute.xlu0 %157  ;;  %v151_v18 = vpop.permute.xlu1 %150 }
 0x181   :  { %252 = vst.msk [vmem:[%s527_s4 + $0x8] sm:$0xf] %vm129_vm2, %v158_v17  ;;  %251 = vst.msk [vmem:[%s526_s3 + $0xc] sm:$0xf] %vm129_vm2, %v151_v18 }
 0x184   :  { %v167_v19 = vpop.permute.xlu0 %166  ;;  %v160_v20 = vpop.permute.xlu1 %159 }
 0x185   :  { %254 = vst.msk [vmem:[%s528_s5 + $0x8] sm:$0xf] %vm129_vm2, %v167_v19  ;;  %253 = vst.msk [vmem:[%s527_s4 + $0xc] sm:$0xf] %vm129_vm2, %v160_v20 }
 0x188   :  { %v176_v21 = vpop.permute.xlu0 %175  ;;  %v169_v22 = vpop.permute.xlu1 %168 }
 0x189   :  { %256 = vst.msk [vmem:[%s526_s3 + $0x10] sm:$0xf] %vm129_vm2, %v176_v21  ;;  %255 = vst.msk [vmem:[%s528_s5 + $0xc] sm:$0xf] %vm129_vm2, %v169_v22 }
 0x18c   :  { %v185_v23 = vpop.permute.xlu0 %184  ;;  %v178_v24 = vpop.permute.xlu1 %177 }
 0x18d   :  { %258 = vst.msk [vmem:[%s527_s4 + $0x10] sm:$0xf] %vm129_vm2, %v185_v23  ;;  %257 = vst.msk [vmem:[%s526_s3 + $0x14] sm:$0xf] %vm129_vm2, %v178_v24 }
 0x190   :  { %v194_v25 = vpop.permute.xlu0 %193  ;;  %v187_v26 = vpop.permute.xlu1 %186 }
 0x191   :  { %260 = vst.msk [vmem:[%s528_s5 + $0x10] sm:$0xf] %vm129_vm2, %v194_v25  ;;  %259 = vst.msk [vmem:[%s527_s4 + $0x14] sm:$0xf] %vm129_vm2, %v187_v26 }
 0x194   :  { %v203_v27 = vpop.permute.xlu0 %202  ;;  %v196_v28 = vpop.permute.xlu1 %195 }
 0x195   :  { %262 = vst.msk [vmem:[%s526_s3 + $0x18] sm:$0xf] %vm129_vm2, %v203_v27  ;;  %261 = vst.msk [vmem:[%s528_s5 + $0x14] sm:$0xf] %vm129_vm2, %v196_v28 }
 0x198   :  { %v212_v29 = vpop.permute.xlu0 %211  ;;  %v205_v30 = vpop.permute.xlu1 %204 }
 0x199   :  { %264 = vst.msk [vmem:[%s527_s4 + $0x18] sm:$0xf] %vm129_vm2, %v212_v29  ;;  %263 = vst.msk [vmem:[%s526_s3 + $0x1c] sm:$0xf] %vm129_vm2, %v205_v30 }
 0x19c   :  { %v214_v31 = vpop.permute.xlu1 %213  ;;  %v135_v32 = vpop.permute.xlu0 %134 }
 0x19d   :  { %265 = vst.msk [vmem:[%s527_s4 + $0x1c] sm:$0xf] %vm129_vm2, %v214_v31  ;;  %139 = vst.msk [vmem:[%s527_s4 + $0x4] sm:$0xf] %vm129_vm2, %v135_v32 }
 0x1a0   :  { %v223_v33 = vpop.permute.xlu1 %222  ;;  %v221_v34 = vpop.permute.xlu0 %220 }
 0x1a1   :  { %267 = vst.msk [vmem:[%s528_s5 + $0x1c] sm:$0xf] %vm129_vm2, %v223_v33  ;;  %266 = vst.msk [vmem:[%s528_s5 + $0x18] sm:$0xf] %vm129_vm2, %v221_v34 }
 0x1a2   :  { %241 = vsyncpa [#allocation3], 1 }
 0x1a3   :  { %242 = vsyncpa [#allocation5], 1 }

</bundles_post_ra>
